<compile_context>
chip_gen: v7x
topology: tpu7x:2x2x1
jax: 0.10.0
libtpu: 0.0.40
codegen_flags: <defaults>
</compile_context>

<pallas_src>
import functools

import jax
import jax.numpy as jnp
from jax.experimental import pallas as pl
from jax.experimental.pallas import tpu as pltpu


_LANE = 128      # lane width: channel (last) dims padded to a multiple of this
_SUBLANE = 8     # sublane width: node dim padded to a multiple of this


def _round_up(x: int, m: int) -> int:
    return (x + m - 1) // m * m


# ----------------------------- Pallas kernel -------------------------------

def _fused_gcn_kernel(a_ref, x_ref, w0_ref, w1_ref, b1_ref, emb_ref, out_ref):
    """Both GCNConv layers fused; all operands VMEM-resident (one grid step).

    layer0: H = ReLU(A_hat @ (X @ W0 + b0))   -- b0 is folded into W0 via the
            ones-column appended to X at the wrapper level.
    layer1: out = A_hat @ (H @ W1 + b1)
    """
    a = a_ref[...]

    # ---- layer 0: feature transform (bias folded into MXU pass) ----
    xwb0 = jnp.dot(x_ref[...], w0_ref[...], preferred_element_type=jnp.float32)
    # graph aggregation + ReLU
    h = jnp.maximum(jnp.dot(a, xwb0, preferred_element_type=jnp.float32), 0.0)
    emb_ref[...] = h.astype(emb_ref.dtype)

    # ---- layer 1: feature transform + bias, then aggregation (no act) ----
    hwb1 = jnp.dot(h, w1_ref[...], preferred_element_type=jnp.float32) + b1_ref[...]
    out_ref[...] = jnp.dot(a, hwb1,
                           preferred_element_type=jnp.float32).astype(out_ref.dtype)


# ----------------------------- Model wrapper -------------------------------

def my_gcn_forward(x, a_hat, params, get_emb: bool = False):
    """MyGCN forward pass (use_bn=False; dropout = identity at inference)."""
    # TODO(synk): training-mode dropout (drop_rate=0.5) omitted — inference semantics.
    n, c_in = x.shape
    c_hid = params["w0"].shape[1]
    c_out = params["w1"].shape[1]

    n_p = _round_up(n, _SUBLANE)
    c_in_p = _round_up(c_in + 1, _LANE)      # +1: ones column carries bias b0
    c_hid_p = _round_up(c_hid, _LANE)
    c_out_p = _round_up(c_out, _LANE)

    # ---- zero-pad everything to lane-dense (multiple-of-128) last dims ----
    a_p = jnp.zeros((n_p, n_p), jnp.float32).at[:n, :n].set(a_hat)
    x_p = (jnp.zeros((n_p, c_in_p), jnp.float32)
           .at[:n, :c_in].set(x)
           .at[:n, c_in].set(1.0))                               # ones column
    w0_p = (jnp.zeros((c_in_p, c_hid_p), jnp.float32)
            .at[:c_in, :c_hid].set(params["w0"])
            .at[c_in, :c_hid].set(params["b0"].reshape(-1)))     # folded bias row
    w1_p = (jnp.zeros((c_hid_p, c_out_p), jnp.float32)
            .at[:c_hid, :c_out].set(params["w1"]))
    b1_p = (jnp.zeros((1, c_out_p), jnp.float32)
            .at[0, :c_out].set(params["b1"].reshape(-1)))

    # NOTE(scale): for large N, cast a_p / x_p to bfloat16 before the call
    # (keeping preferred_element_type=f32) and row-tile A_hat per layer with a
    # "parallel" row grid axis; at N=16 f32 full-residency is optimal.

    flops = (2 * n_p * c_in_p * c_hid_p + 2 * n_p * n_p * c_hid_p
             + 2 * n_p * c_hid_p * c_out_p + 2 * n_p * n_p * c_out_p)
    bytes_accessed = 4 * (a_p.size + x_p.size + w0_p.size + w1_p.size + b1_p.size
                          + n_p * c_hid_p + n_p * c_out_p)

    emb_p, out_p = pl.pallas_call(
        _fused_gcn_kernel,
        out_shape=(jax.ShapeDtypeStruct((n_p, c_hid_p), jnp.float32),
                   jax.ShapeDtypeStruct((n_p, c_out_p), jnp.float32)),
        grid_spec=pl.GridSpec(
            grid=(1,),
            in_specs=[
                pl.BlockSpec((n_p, n_p), lambda i: (0, 0),
                             memory_space=pltpu.VMEM),           # A_hat
                pl.BlockSpec((n_p, c_in_p), lambda i: (0, 0),
                             memory_space=pltpu.VMEM),           # [X | 1]
                pl.BlockSpec((c_in_p, c_hid_p), lambda i: (0, 0),
                             memory_space=pltpu.VMEM),           # [W0 ; b0]
                pl.BlockSpec((c_hid_p, c_out_p), lambda i: (0, 0),
                             memory_space=pltpu.VMEM),           # W1
                pl.BlockSpec((1, c_out_p), lambda i: (0, 0),
                             memory_space=pltpu.VMEM),           # b1
            ],
            out_specs=(
                pl.BlockSpec((n_p, c_hid_p), lambda i: (0, 0),
                             memory_space=pltpu.VMEM),           # emb (H)
                pl.BlockSpec((n_p, c_out_p), lambda i: (0, 0),
                             memory_space=pltpu.VMEM),           # out
            ),
        ),
        compiler_params=pltpu.CompilerParams(
            dimension_semantics=("arbitrary",)),
        cost_estimate=pl.CostEstimate(flops=flops, transcendentals=0,
                                      bytes_accessed=bytes_accessed),
    )(a_p, x_p, w0_p, w1_p, b1_p)

    if get_emb:
        return emb_p[:n, :c_hid]
    return out_p[:n, :c_out]


# ------------------------ Parameter / graph builders ------------------------

def make_params(key, in_channels, hid_channels, num_classes):
    """Deterministic init matching nn.Linear's U(-1/sqrt(fan_in), +1/sqrt(fan_in))."""
    k0, k1, k2, k3 = jax.random.split(key, 4)
    lim0 = 1.0 / jnp.sqrt(in_channels)
    lim1 = 1.0 / jnp.sqrt(hid_channels)
    return {
        "w0": jax.random.uniform(k0, (in_channels, hid_channels),
                                 jnp.float32, -lim0, lim0),
        "b0": jax.random.uniform(k1, (1, hid_channels),
                                 jnp.float32, -lim0, lim0),
        "w1": jax.random.uniform(k2, (hid_channels, num_classes),
                                 jnp.float32, -lim1, lim1),
        "b1": jax.random.uniform(k3, (1, num_classes),
                                 jnp.float32, -lim1, lim1),
    }


def make_normalized_adj(n):
    """Deterministic synthetic graph: ring + self loops, GCN normalization."""
    idx = jnp.arange(n)
    adj = jnp.zeros((n, n), jnp.float32)
    adj = adj.at[idx, (idx + 1) % n].set(1.0)
    adj = adj.at[(idx + 1) % n, idx].set(1.0)
    adj = adj + jnp.eye(n, dtype=jnp.float32)          # A + I
    deg = adj.sum(axis=1)
    d_inv_sqrt = 1.0 / jnp.sqrt(deg)
    return adj * d_inv_sqrt[:, None] * d_inv_sqrt[None, :]


# --------------------------------- Main -------------------------------------

if __name__ == "__main__":
    N = 16              # number of vertices
    C_IN = 8            # in_channels
    C_HID = 32          # hid_channels
    NUM_CLASSES = 4     # num_classes

    key = jax.random.PRNGKey(0)
    kx, kp = jax.random.split(key)

    X = jax.random.normal(kx, (N, C_IN), jnp.float32)
    A_hat = make_normalized_adj(N)
    params = make_params(kp, C_IN, C_HID, NUM_CLASSES)

    out = my_gcn_forward(X, A_hat, params)
    out = jax.block_until_ready(out)

    # Pure-JAX reference check
    ref_h = jnp.maximum(A_hat @ (X @ params["w0"] + params["b0"]), 0.0)
    ref_o = A_hat @ (ref_h @ params["w1"] + params["b1"])
    assert out.shape == (N, NUM_CLASSES)
    assert jnp.allclose(out, ref_o, atol=1e-5, rtol=1e-5)

    emb = jax.block_until_ready(my_gcn_forward(X, A_hat, params, get_emb=True))
    assert emb.shape == (N, C_HID)
    assert jnp.allclose(emb, ref_h, atol=1e-5, rtol=1e-5)

    print("KERNEL_OK")
</pallas_src>

<mosaic_0001>
module attributes {stable_mosaic.version = 11 : i64} {
  func.func @_fused_gcn_kernel(%arg0: i32, %arg1: memref<16x16xf32, #tpu.memory_space<vmem>>, %arg2: memref<16x128xf32, #tpu.memory_space<vmem>>, %arg3: memref<128x128xf32, #tpu.memory_space<vmem>>, %arg4: memref<128x128xf32, #tpu.memory_space<vmem>>, %arg5: memref<1x128xf32, #tpu.memory_space<vmem>>, %arg6: memref<16x128xf32, #tpu.memory_space<vmem>>, %arg7: memref<16x128xf32, #tpu.memory_space<vmem>>) attributes {dimension_semantics = [#tpu.dimension_semantics<arbitrary>], iteration_bounds = array<i64: 1>, scalar_prefetch = 0 : i64, scratch_operands = 0 : i64, tpu.core_type = #tpu.core_type<tc>, window_params = [{pipeline_mode = #tpu.pipeline_mode<synchronous>, transform_indices = @transform_0, window_bounds = array<i64: 16, 16>}, {pipeline_mode = #tpu.pipeline_mode<synchronous>, transform_indices = @transform_1, window_bounds = array<i64: 16, 128>}, {pipeline_mode = #tpu.pipeline_mode<synchronous>, transform_indices = @transform_2, window_bounds = array<i64: 128, 128>}, {pipeline_mode = #tpu.pipeline_mode<synchronous>, transform_indices = @transform_3, window_bounds = array<i64: 128, 128>}, {pipeline_mode = #tpu.pipeline_mode<synchronous>, transform_indices = @transform_4, window_bounds = array<i64: 1, 128>}, {pipeline_mode = #tpu.pipeline_mode<synchronous>, transform_indices = @transform_5, window_bounds = array<i64: 16, 128>}, {pipeline_mode = #tpu.pipeline_mode<synchronous>, transform_indices = @transform_6, window_bounds = array<i64: 16, 128>}]} {
    %c0 = arith.constant 0 : index
    %c0_0 = arith.constant 0 : index
    %0 = vector.load %arg1[%c0, %c0_0] : memref<16x16xf32, #tpu.memory_space<vmem>>, vector<16x16xf32>
    %c0_1 = arith.constant 0 : index
    %c0_2 = arith.constant 0 : index
    %1 = vector.load %arg2[%c0_1, %c0_2] : memref<16x128xf32, #tpu.memory_space<vmem>>, vector<16x128xf32>
    %c0_3 = arith.constant 0 : index
    %c0_4 = arith.constant 0 : index
    %2 = vector.load %arg3[%c0_3, %c0_4] : memref<128x128xf32, #tpu.memory_space<vmem>>, vector<128x128xf32>
    %cst = arith.constant dense<0.000000e+00> : vector<16x128xf32>
    %3 = tpu.matmul %1, %2, %cst {dimension_numbers = #tpu.dot_dimension_numbers<[1], [0], [0], [1], [0, 0, 1, 1], [], []>} : vector<16x128xf32>, vector<128x128xf32>, vector<16x128xf32> -> vector<16x128xf32>
    %cst_5 = arith.constant dense<0.000000e+00> : vector<16x128xf32>
    %4 = tpu.matmul %0, %3, %cst_5 {dimension_numbers = #tpu.dot_dimension_numbers<[1], [0], [0], [1], [0, 0, 1, 1], [], []>} : vector<16x16xf32>, vector<16x128xf32>, vector<16x128xf32> -> vector<16x128xf32>
    %cst_6 = arith.constant 0.000000e+00 : f32
    %5 = vector.broadcast %cst_6 : f32 to vector<16x128xf32>
    %6 = arith.maximumf %4, %5 : vector<16x128xf32>
    %c0_7 = arith.constant 0 : index
    %c0_8 = arith.constant 0 : index
    %7 = vector.load %arg6[%c0_7, %c0_8] : memref<16x128xf32, #tpu.memory_space<vmem>>, vector<16x128xf32>
    tpu.vector_store %arg6[%c0_7, %c0_8], %6 {strides = array<i32>} : memref<16x128xf32, #tpu.memory_space<vmem>>, vector<16x128xf32>,
    %c0_9 = arith.constant 0 : index
    %c0_10 = arith.constant 0 : index
    %8 = vector.load %arg4[%c0_9, %c0_10] : memref<128x128xf32, #tpu.memory_space<vmem>>, vector<128x128xf32>
    %cst_11 = arith.constant dense<0.000000e+00> : vector<16x128xf32>
    %9 = tpu.matmul %6, %8, %cst_11 {dimension_numbers = #tpu.dot_dimension_numbers<[1], [0], [0], [1], [0, 0, 1, 1], [], []>} : vector<16x128xf32>, vector<128x128xf32>, vector<16x128xf32> -> vector<16x128xf32>
    %c0_12 = arith.constant 0 : index
    %c0_13 = arith.constant 0 : index
    %10 = vector.load %arg5[%c0_12, %c0_13] : memref<1x128xf32, #tpu.memory_space<vmem>>, vector<1x128xf32>
    %11 = vector.broadcast %10 : vector<1x128xf32> to vector<16x128xf32>
    %12 = arith.addf %9, %11 : vector<16x128xf32>
    %cst_14 = arith.constant dense<0.000000e+00> : vector<16x128xf32>
    %13 = tpu.matmul %0, %12, %cst_14 {dimension_numbers = #tpu.dot_dimension_numbers<[1], [0], [0], [1], [0, 0, 1, 1], [], []>} : vector<16x16xf32>, vector<16x128xf32>, vector<16x128xf32> -> vector<16x128xf32>
    %c0_15 = arith.constant 0 : index
    %c0_16 = arith.constant 0 : index
    %14 = vector.load %arg7[%c0_15, %c0_16] : memref<16x128xf32, #tpu.memory_space<vmem>>, vector<16x128xf32>
    tpu.vector_store %arg7[%c0_15, %c0_16], %13 {strides = array<i32>} : memref<16x128xf32, #tpu.memory_space<vmem>>, vector<16x128xf32>,
    return
  }
  func.func @transform_0(%arg0: i32) -> (i32, i32) {
    %c0_i32 = arith.constant 0 : i32
    %c0_i32_0 = arith.constant 0 : i32
    %c0_i32_1 = arith.constant 0 : i32
    return %c0_i32, %c0_i32_0 : i32, i32
  }
  func.func @transform_1(%arg0: i32) -> (i32, i32) {
    %c0_i32 = arith.constant 0 : i32
    %c0_i32_0 = arith.constant 0 : i32
    %c0_i32_1 = arith.constant 0 : i32
    return %c0_i32, %c0_i32_0 : i32, i32
  }
  func.func @transform_2(%arg0: i32) -> (i32, i32) {
    %c0_i32 = arith.constant 0 : i32
    %c0_i32_0 = arith.constant 0 : i32
    %c0_i32_1 = arith.constant 0 : i32
    return %c0_i32, %c0_i32_0 : i32, i32
  }
  func.func @transform_3(%arg0: i32) -> (i32, i32) {
    %c0_i32 = arith.constant 0 : i32
    %c0_i32_0 = arith.constant 0 : i32
    %c0_i32_1 = arith.constant 0 : i32
    return %c0_i32, %c0_i32_0 : i32, i32
  }
  func.func @transform_4(%arg0: i32) -> (i32, i32) {
    %c0_i32 = arith.constant 0 : i32
    %c0_i32_0 = arith.constant 0 : i32
    %c0_i32_1 = arith.constant 0 : i32
    return %c0_i32, %c0_i32_0 : i32, i32
  }
  func.func @transform_5(%arg0: i32) -> (i32, i32) {
    %c0_i32 = arith.constant 0 : i32
    %c0_i32_0 = arith.constant 0 : i32
    %c0_i32_1 = arith.constant 0 : i32
    return %c0_i32, %c0_i32_0 : i32, i32
  }
  func.func @transform_6(%arg0: i32) -> (i32, i32) {
    %c0_i32 = arith.constant 0 : i32
    %c0_i32_0 = arith.constant 0 : i32
    %c0_i32_1 = arith.constant 0 : i32
    return %c0_i32, %c0_i32_0 : i32, i32
  }
}

</mosaic_0001>

<bundles_post_ra>
// kernel: tpu_custom_call.1
= control target key start
LH: loop header
LB: loop body
LE: loop exit
PB: predicated region body
PF: predicated region fallthrough
CT: control target
= control target key end

     0   :  { %12 = vsyncpa [#allocation3], 0  ;;  %s979_s0 = inlined_call_operand.hbm [shape: f32[16,16], index: 0, kind: input, shape index: {}]   ;;  %s980_s1 = inlined_call_operand.hbm [shape: f32[16,128], index: 1, kind: input, shape index: {}]   ;;  %s981_s2 = inlined_call_operand.hbm [shape: f32[128,128], index: 2, kind: input, shape index: {}]   ;;  %s982_s3 = inlined_call_operand.hbm [shape: f32[128,128], index: 3, kind: input, shape index: {}]   ;;  %s983_s4 = inlined_call_operand.vmem [shape: f32[1,128], index: 4, kind: input, shape index: {}]   ;;  %s984_s5 = inlined_call_operand.hbm [shape: f32[16,128], index: 5, kind: output, shape index: {0}]   ;;  %s985_s6 = inlined_call_operand.hbm [shape: f32[16,128], index: 6, kind: output, shape index: {1}]  }
   0x1   :  { %13 = vsyncpa [#allocation6], 0 }
   0x2   :  { %14 = vsyncpa [#allocation9], 0 }
   0x3   :  { %15 = vsyncpa [#allocation4], 0 }
   0x4   :  { %16 = vsyncpa [#allocation12], 0  ;;  %s825_s21 = smov [#allocation5]   ;;  %s826_s23 = smov [#allocation2]  }
   0x5   :  { %s34_s22 = sshll.u32 %s825_s21, 4  ;;  %s22_s24 = sshll.u32 %s826_s23, 4  ;;  %s35_s22 = int_to_ptr.vmem [resolvable:$true] %s34_s22  ;;  %s868_s24 = int_to_ptr.vmem [resolvable:$true] %s22_s24 }
   0x6   :  { %s683_s27 = scalar_lea.hbm %s980_s1, 256 }
   0x7   :  { %p684_p0 = scmp.ne.s32.totalorder %s980_s1, %s683_s27  ;;  %p687_p1 = scmp.lt.u32.totalorder %s683_s27, %s980_s1 }
   0x9   :  { %p689_p2 = pnand %p687_p1, %p684_p0 }
   0xb   :  { %692 = shalt.err (!%p689_p2)
}
   0xc   :  { %s693_s8 = scalar_lea.vmem %s35_s22, 256  ;;  %p698_p4 = scmp.lt.s32.totalorder %s35_s22, %s35_s22 }
   0xd   :  { %p694_p3 = scmp.ne.s32.totalorder %s35_s22, %s693_s8  ;;  %p699_p5 = scmp.lt.s32.totalorder %s693_s8, %s693_s8 }
   0xf   :  { %p700_p6 = por %p699_p5, %p698_p4 }
  0x11   :  { %p701_p7 = pnand %p700_p6, %p694_p3 }
  0x13   :  { %704 = shalt.err (!%p701_p7)
}
  0x14   :  { %s827_s9 = smov 128   ;;  %s828_s10 = smov 8  }
  0x15   :  { %40 = dma.hbm_to_vmem [thread:$0]  %s980_s1, 256, %s35_s22, [#allocation6], %s827_s9, %s827_s9, %s828_s10  }
  0x16   :  { %s705_s15 = scalar_lea.hbm %s979_s0, 256 }
  0x17   :  { %p706_p8 = scmp.ne.s32.totalorder %s979_s0, %s705_s15  ;;  %p709_p9 = scmp.lt.u32.totalorder %s705_s15, %s979_s0 }
  0x19   :  { %p711_p10 = pnand %p709_p9, %p706_p8 }
  0x1b   :  { %714 = shalt.err (!%p711_p10)
}
  0x1c   :  { %s715_s20 = scalar_lea.vmem %s868_s24, 256  ;;  %p720_p12 = scmp.lt.s32.totalorder %s868_s24, %s868_s24 }
  0x1d   :  { %p716_p11 = scmp.ne.s32.totalorder %s868_s24, %s715_s20  ;;  %p721_p13 = scmp.lt.s32.totalorder %s715_s20, %s715_s20 }
  0x1f   :  { %p722_p0 = por %p721_p13, %p720_p12 }
  0x21   :  { %p723_p1 = pnand %p722_p0, %p716_p11 }
  0x23   :  { %726 = shalt.err (!%p723_p1)
}
  0x24   :  { %28 = dma.hbm_to_vmem [thread:$0]  %s979_s0, 256, %s868_s24, [#allocation3], %s827_s9, %s827_s9, %s828_s10  }
  0x25   :  { %s829_s22 = smov [#allocation7]   ;;  %s830_s25 = smov [#allocation8]  }
  0x26   :  { %s46_s23 = sshll.u32 %s829_s22, 4  ;;  %s58_s26 = sshll.u32 %s830_s25, 4  ;;  %s47_s23 = int_to_ptr.vmem [resolvable:$true] %s46_s23  ;;  %s905_s26 = int_to_ptr.vmem [resolvable:$true] %s58_s26 }
  0x27   :  { %s727_s29 = scalar_lea.hbm %s981_s2, 2048 }
  0x28   :  { %p728_p2 = scmp.ne.s32.totalorder %s981_s2, %s727_s29  ;;  %p731_p3 = scmp.lt.u32.totalorder %s727_s29, %s981_s2 }
  0x2a   :  { %p733_p4 = pnand %p731_p3, %p728_p2 }
  0x2c   :  { %736 = shalt.err (!%p733_p4)
}
  0x2d   :  { %s737_s0 = scalar_lea.vmem %s47_s23, 2048  ;;  %p742_p6 = scmp.lt.s32.totalorder %s47_s23, %s47_s23 }
  0x2e   :  { %p738_p5 = scmp.ne.s32.totalorder %s47_s23, %s737_s0  ;;  %p743_p7 = scmp.lt.s32.totalorder %s737_s0, %s737_s0 }
  0x30   :  { %p744_p8 = por %p743_p7, %p742_p6 }
  0x32   :  { %p745_p9 = pnand %p744_p8, %p738_p5 }
  0x34   :  { %748 = shalt.err (!%p745_p9)
}
  0x35   :  { %52 = dma.hbm_to_vmem [thread:$0]  %s981_s2, 2048, %s47_s23, [#allocation6], %s827_s9, %s827_s9, %s828_s10  }
  0x36   :  { %s749_s15 = scalar_lea.hbm %s982_s3, 2048 }
  0x37   :  { %p750_p10 = scmp.ne.s32.totalorder %s982_s3, %s749_s15  ;;  %p753_p11 = scmp.lt.u32.totalorder %s749_s15, %s982_s3 }
  0x39   :  { %p755_p12 = pnand %p753_p11, %p750_p10 }
  0x3b   :  { %758 = shalt.err (!%p755_p12)
}
  0x3c   :  { %s759_s20 = scalar_lea.vmem %s905_s26, 2048  ;;  %p764_p0 = scmp.lt.s32.totalorder %s905_s26, %s905_s26 }
  0x3d   :  { %p760_p13 = scmp.ne.s32.totalorder %s905_s26, %s759_s20  ;;  %p765_p1 = scmp.lt.s32.totalorder %s759_s20, %s759_s20 }
  0x3f   :  { %p766_p2 = por %p765_p1, %p764_p0 }
  0x41   :  { %p767_p3 = pnand %p766_p2, %p760_p13 }
  0x43   :  { %770 = shalt.err (!%p767_p3)
}
  0x44   :  { %64 = dma.hbm_to_vmem [thread:$0]  %s982_s3, 2048, %s905_s26, [#allocation9], %s827_s9, %s827_s9, %s828_s10  }
  0x45   :  { %815 = dma.done.wait [#allocation3], 256  }
  0x46   :  { %816 = vsyncadd [#allocation3], 4294967040 }
  0x47   :  { %817 = dma.done.wait [#allocation6], 2304  }
  0x48   :  { %818 = vsyncadd [#allocation6], 4294964992 }
  0x49   :  { %819 = dma.done.wait [#allocation9], 2048  }
  0x4a   :  { %820 = vsyncadd [#allocation9], 4294965248  ;;  %v83_v0 = vld [vmem:[#allocation7] sm:$0xff]  ;;  %v84_v1 = vld [vmem:[#allocation7 + $0x8] sm:$0xff]  ;;  %vm174_vm0 = vcmask 130048   ;;  %s831_s22 = smov [#allocation10]  }
  0x4b   :  { %v85_v2 = vld [vmem:[#allocation7 + $0x10] sm:$0xff]  ;;  %v603_v3 = vpack.c.bf16 %v84_v1, %v83_v0  ;;  %v86_v4 = vld [vmem:[#allocation7 + $0x18] sm:$0xff]  ;;  %v87_v6 = vld [vmem:[#allocation7 + $0x20] sm:$0xff]  ;;  %s440_s23 = sshll.u32 %s831_s22, 4  ;;  %s441_s23 = int_to_ptr.vmem [resolvable:$true] %s440_s23 }
  0x4c   :  { %v607_v5 = vpack.c.bf16 %v86_v4, %v85_v2  ;;  %v88_v7 = vld [vmem:[#allocation7 + $0x28] sm:$0xff]  ;;  %v81_v9 = vld [vmem:[#allocation5] sm:$0xff]  ;;  %v90_v11 = vld [vmem:[#allocation7 + $0x38] sm:$0xff]  ;;  %s771_s25 = scalar_lea.vmem %s441_s23, 256  ;;  %p776_p5 = scmp.lt.s32.totalorder %s441_s23, %s441_s23 }
  0x4d   :  { %604 = vmatprep.subr.bf16.mxu0 %v603_v3  ;;  %v611_v8 = vpack.c.bf16 %v88_v7, %v87_v6  ;;  %v89_v10 = vld [vmem:[#allocation7 + $0x30] sm:$0xff]  ;;  %551 = vmatprep.mubr.f32.mxu0 %v81_v9  ;;  %v91_v13 = vld [vmem:[#allocation7 + $0x40] sm:$0xff]  ;;  %v92_v14 = vld [vmem:[#allocation7 + $0x48] sm:$0xff]  ;;  %p772_p4 = scmp.ne.s32.totalorder %s441_s23, %s771_s25  ;;  %p777_p6 = scmp.lt.s32.totalorder %s771_s25, %s771_s25 }
  0x4e   :  { %606 = vmatpush3.bf16.msra.mxu0 %v603_v3  ;;  %v615_v12 = vpack.c.bf16 %v90_v11, %v89_v10  ;;  %v619_v15 = vpack.c.bf16 %v92_v14, %v91_v13  ;;  %v93_v16 = vld [vmem:[#allocation7 + $0x50] sm:$0xff]  ;;  %v94_v17 = vld [vmem:[#allocation7 + $0x58] sm:$0xff]  ;;  %v95_v19 = vld [vmem:[#allocation7 + $0x60] sm:$0xff] }
  0x4f   :  { %608 = vmatprep.subr.bf16.mxu0 %v607_v5  ;;  %v623_v18 = vpack.c.bf16 %v94_v17, %v93_v16  ;;  %v96_v20 = vld [vmem:[#allocation7 + $0x68] sm:$0xff]  ;;  %v97_v22 = vld [vmem:[#allocation7 + $0x70] sm:$0xff]  ;;  %v98_v23 = vld [vmem:[#allocation7 + $0x78] sm:$0xff]  ;;  %p778_p7 = por %p777_p6, %p776_p5 }
  0x50   :  { %v627_v21 = vpack.c.bf16 %v96_v20, %v95_v19  ;;  %v631_v24 = vpack.c.bf16 %v98_v23, %v97_v22  ;;  %v82_v25 = vld [vmem:[#allocation5 + $0x8] sm:$0xff]  ;;  %v79_v26 = vld [vmem:[#allocation2] sm:$0xff]  ;;  %v261_v28 = vld [vmem:[#allocation8 + $0x8] sm:$0xff] }
  0x51   :  { %558 = vmatprep.mubr.msk.f32.mxu1 %vm174_vm0, %v79_v26  ;;  %v260_v27 = vld [vmem:[#allocation8] sm:$0xff]  ;;  %v262_v33 = vld [vmem:[#allocation8 + $0x10] sm:$0xff]  ;;  %v263_v34 = vld [vmem:[#allocation8 + $0x18] sm:$0xff]  ;;  %p779_p8 = pnand %p778_p7, %p772_p4 }
  0x52   :  { %610 = vmatpush3.bf16.msra.mxu0 %v607_v5  ;;  %v639_v32 = vpack.c.bf16 %v261_v28, %v260_v27  ;;  %v80_v35 = vld [vmem:[#allocation2 + $0x8] sm:$0xff]  ;;  %v643_v36 = vpack.c.bf16 %v263_v34, %v262_v33  ;;  %v264_v37 = vld [vmem:[#allocation8 + $0x20] sm:$0xff]  ;;  %v266_v40 = vld [vmem:[#allocation8 + $0x30] sm:$0xff] }
  0x53   :  { %612 = vmatprep.subr.bf16.mxu0 %v611_v8  ;;  %v265_v38 = vld [vmem:[#allocation8 + $0x28] sm:$0xff]  ;;  %v267_v41 = vld [vmem:[#allocation8 + $0x38] sm:$0xff]  ;;  %v268_v43 = vld [vmem:[#allocation8 + $0x40] sm:$0xff] }
  0x54   :  { %v647_v39 = vpack.c.bf16 %v265_v38, %v264_v37  ;;  %v651_v42 = vpack.c.bf16 %v267_v41, %v266_v40  ;;  %v269_v44 = vld [vmem:[#allocation8 + $0x48] sm:$0xff]  ;;  %v270_v46 = vld [vmem:[#allocation8 + $0x50] sm:$0xff]  ;;  %v271_v47 = vld [vmem:[#allocation8 + $0x58] sm:$0xff] }
  0x55   :  { %v655_v45 = vpack.c.bf16 %v269_v44, %v268_v43  ;;  %v659_v48 = vpack.c.bf16 %v271_v47, %v270_v46  ;;  %v272_v49 = vld [vmem:[#allocation8 + $0x60] sm:$0xff]  ;;  %v273_v50 = vld [vmem:[#allocation8 + $0x68] sm:$0xff]  ;;  %v274_v52 = vld [vmem:[#allocation8 + $0x70] sm:$0xff] }
  0x56   :  { %614 = vmatpush3.bf16.msra.mxu0 %v611_v8  ;;  %v663_v51 = vpack.c.bf16 %v273_v50, %v272_v49  ;;  %v275_v53 = vld [vmem:[#allocation8 + $0x78] sm:$0xff]  ;;  %v472_v59 = vld [vmem:[%s983_s4] ss:$0 sm:$0xff] }
  0x57   :  { %616 = vmatprep.subr.bf16.mxu0 %v615_v12  ;;  %v667_v54 = vpack.c.bf16 %v275_v53, %v274_v52 }
  0x5a   :  { %618 = vmatpush3.bf16.msra.mxu0 %v615_v12 }
  0x5b   :  { %620 = vmatprep.subr.bf16.mxu0 %v619_v15 }
  0x5e   :  { %622 = vmatpush3.bf16.msra.mxu0 %v619_v15 }
  0x5f   :  { %624 = vmatprep.subr.bf16.mxu0 %v623_v18 }
  0x62   :  { %626 = vmatpush3.bf16.msra.mxu0 %v623_v18 }
  0x63   :  { %628 = vmatprep.subr.bf16.mxu0 %v627_v21 }
  0x66   :  { %630 = vmatpush3.bf16.msra.mxu0 %v627_v21 }
  0x67   :  { %632 = vmatprep.subr.bf16.mxu0 %v631_v24 }
  0x6a   :  { %634 = vmatpush3.bf16.msra.mxu0 %v631_v24 }
  0x6d   :  { %552 = vmatmul.mubr.f32.vlgmr.msra.gmra.mrb[0].mxu0 %v82_v25 }
  0x6e   :  { %600 = vmatprep.mubr.msk.f32.mxu0 %vm174_vm0, %v79_v26 }
 0x140   :  { %v553_v29 = vpop.f32.mrb[0].mxu0 }
 0x141   :  { %v165_v30 = vpop.f32.mrb[1].mxu0 }
 0x142   :  { %v635_v31 = vpack.c.bf16 %v553_v29, %v165_v30 }
 0x144   :  { %636 = vmatprep.subr.bf16.mxu1 %v635_v31 }
 0x145   :  { %638 = vmatpush3.bf16.msra.mxu1 %v635_v31 }
 0x146   :  { %640 = vmatprep.subr.bf16.mxu1 %v639_v32 }
 0x148   :  { %559 = vmatmul.mubr.msk.f32.vlgmr.msra.gmra.mrb[0].mxu1 %vm174_vm0, %v80_v35 }
 0x149   :  { %642 = vmatpush3.bf16.msra.mxu1 %v639_v32 }
 0x14a   :  { %644 = vmatprep.subr.bf16.mxu1 %v643_v36 }
 0x14d   :  { %646 = vmatpush3.bf16.msra.mxu1 %v643_v36 }
 0x14e   :  { %648 = vmatprep.subr.bf16.mxu1 %v647_v39 }
 0x151   :  { %650 = vmatpush3.bf16.msra.mxu1 %v647_v39 }
 0x152   :  { %652 = vmatprep.subr.bf16.mxu1 %v651_v42 }
 0x155   :  { %654 = vmatpush3.bf16.msra.mxu1 %v651_v42 }
 0x156   :  { %656 = vmatprep.subr.bf16.mxu1 %v655_v45 }
 0x159   :  { %658 = vmatpush3.bf16.msra.mxu1 %v655_v45 }
 0x15a   :  { %660 = vmatprep.subr.bf16.mxu1 %v659_v48 }
 0x15d   :  { %662 = vmatpush3.bf16.msra.mxu1 %v659_v48 }
 0x15e   :  { %664 = vmatprep.subr.bf16.mxu1 %v663_v51 }
 0x161   :  { %666 = vmatpush3.bf16.msra.mxu1 %v663_v51 }
 0x162   :  { %668 = vmatprep.subr.bf16.mxu1 %v667_v54 }
 0x165   :  { %670 = vmatpush3.bf16.msra.mxu1 %v667_v54 }
 0x21b   :  { %v560_v55 = vpop.f32.mrb[0].mxu1 }
 0x21c   :  { %v257_v56 = vmax.f32 %v560_v55, 0.0  ;;  %v247_v57 = vpop.f32.mrb[1].mxu1 }
 0x21d   :  { %v256_v58 = vmax.f32 %v247_v57, 0.0 }
 0x21e   :  { %259 = vst [vmem:[#allocation10 + $0x8] sm:$0xff] %v257_v56 }
 0x21f   :  { %258 = vst [vmem:[#allocation10] sm:$0xff] %v256_v58  ;;  %593 = vmatprep.mubr.f32.mxu1 %v256_v58 }
 0x220   :  { %594 = vmatmul.mubr.f32.vlgmr.msra.gmra.mrb[2].mxu1 %v257_v56 }
 0x2f3   :  { %v595_v60 = vpop.f32.mrb[2].mxu1 }
 0x2f4   :  { %v355_v61 = vadd.f32 %v595_v60, %v472_v59  ;;  %v349_v62 = vpop.f32.mrb[3].mxu1 }
 0x2f5   :  { %v350_v63 = vadd.f32 %v472_v59, %v349_v62 }
 0x2f7   :  { %v671_v0 = vpack.c.bf16 %v355_v61, %v350_v63 }
 0x2f9   :  { %672 = vmatprep.subr.bf16.mxu0 %v671_v0 }
 0x2fa   :  { %674 = vmatpush3.bf16.msra.mxu0 %v671_v0 }
 0x2fd   :  { %601 = vmatmul.mubr.msk.f32.vlgmr.msra.gmra.mrb[2].mxu0 %vm174_vm0, %v80_v35 }
 0x2fe   :  { %782 = shalt.err (!%p779_p8)
}
 0x2ff   :  { %s783_s27 = scalar_lea.hbm %s984_s5, 256 }
 0x300   :  { %p784_p9 = scmp.ne.s32.totalorder %s984_s5, %s783_s27  ;;  %p787_p10 = scmp.lt.u32.totalorder %s783_s27, %s984_s5 }
 0x302   :  { %p789_p11 = pnand %p787_p10, %p784_p9 }
 0x304   :  { %792 = shalt.err (!%p789_p11)
}
 0x305   :  { %446 = dma.vmem_to_hbm [thread:$0]  %s441_s23, 256, %s984_s5, [#allocation4], %s827_s9, %s827_s9, %s828_s10  }
 0x306   :  { %s832_s0 = smov [#allocation11]  }
 0x307   :  { %s452_s24 = sshll.u32 %s832_s0, 4  ;;  %s453_s24 = int_to_ptr.vmem [resolvable:$true] %s452_s24 }
 0x308   :  { %s793_s12 = scalar_lea.vmem %s453_s24, 256  ;;  %p798_p13 = scmp.lt.s32.totalorder %s453_s24, %s453_s24 }
 0x309   :  { %p794_p12 = scmp.ne.s32.totalorder %s453_s24, %s793_s12  ;;  %p799_p0 = scmp.lt.s32.totalorder %s793_s12, %s793_s12 }
 0x30b   :  { %p800_p1 = por %p799_p0, %p798_p13 }
 0x30d   :  { %p801_p2 = pnand %p800_p1, %p794_p12 }
 0x3d0   :  { %v602_v1 = vpop.f32.mrb[2].mxu0 }
 0x3d1   :  { %434 = vst [vmem:[#allocation11 + $0x8] sm:$0xff] %v602_v1  ;;  %v424_v2 = vpop.f32.mrb[3].mxu0 }
 0x3d2   :  { %433 = vst [vmem:[#allocation11] sm:$0xff] %v424_v2 }
 0x3d3   :  { %804 = shalt.err (!%p801_p2)
}
 0x3d4   :  { %s805_s15 = scalar_lea.hbm %s985_s6, 256 }
 0x3d5   :  { %p806_p3 = scmp.ne.s32.totalorder %s985_s6, %s805_s15  ;;  %p809_p4 = scmp.lt.u32.totalorder %s805_s15, %s985_s6 }
 0x3d7   :  { %p811_p5 = pnand %p809_p4, %p806_p3 }
 0x3d9   :  { %814 = shalt.err (!%p811_p5)
}
 0x3da   :  { %458 = dma.vmem_to_hbm [thread:$0]  %s453_s24, 256, %s985_s6, [#allocation12], %s827_s9, %s827_s9, %s828_s10  }
 0x3db   :  { %821 = dma.done.wait [#allocation4], 256  }
 0x3dc   :  { %822 = vsyncadd [#allocation4], 4294967040 }
 0x3dd   :  { %823 = dma.done.wait [#allocation12], 256  }
 0x3de   :  { %824 = vsyncadd [#allocation12], 4294967040 }
 0x3df   :  { %465 = vsyncpa [#allocation3], 1 }
 0x3e0   :  { %466 = vsyncpa [#allocation6], 1 }
 0x3e1   :  { %467 = vsyncpa [#allocation9], 1 }
 0x3e2   :  { %468 = vsyncpa [#allocation4], 1 }
 0x3e3   :  { %469 = vsyncpa [#allocation12], 1 }

</bundles_post_ra>
